<compile_context>
chip_gen: v7x
topology: tpu7x:2x2x1
jax: 0.10.0
libtpu: 0.0.40
codegen_flags: <defaults>
</compile_context>

<pallas_src>
import functools

import jax
import jax.numpy as jnp
from jax.experimental import pallas as pl
from jax.experimental.pallas import tpu as pltpu

NEG_INF = -1e30
_MiB = 1024 * 1024


def _round_up(x, m):
    return (x + m - 1) // m * m


def _vmem_budget_bytes():
    """~75% of physical VMEM, clamped to [48, 96] MiB (v5e/v6e -> 96, v7x -> 48)."""
    try:
        cap = pltpu.get_tpu_info().vmem_capacity_bytes
    except Exception:
        cap = 64 * _MiB                      # conservative (v7x-sized) fallback
    return int(min(max(cap * 3 // 4, 48 * _MiB), 96 * _MiB))


def _invariant_spec(block_shape, index_map):
    """Single-buffered BlockSpec for grid-invariant operands (halves their VMEM)."""
    try:
        return pl.BlockSpec(block_shape, index_map, pipeline_mode=pl.Buffered(1))
    except Exception:                        # older jax without pipeline_mode
        return pl.BlockSpec(block_shape, index_map)


# ------------------------------------------------------------------ GRU kernels
def _gru_step(h, gx, whh, bhh, Hp):
    """One GRU cell update. h:(BB,Hp) f32, gx:(BB,3Hp) bf16, whh:(Hp,3Hp) bf16,
    bhh:(1,3Hp) f32. PyTorch gate order [r, z, n]; gate slices are 128-lane aligned."""
    gh = jnp.dot(h.astype(whh.dtype), whh,
                 preferred_element_type=jnp.float32) + bhh
    gx = gx.astype(jnp.float32)
    r = jax.nn.sigmoid(gx[:, :Hp] + gh[:, :Hp])
    z = jax.nn.sigmoid(gx[:, Hp:2 * Hp] + gh[:, Hp:2 * Hp])
    n = jnp.tanh(gx[:, 2 * Hp:] + r * gh[:, 2 * Hp:])
    return (1.0 - z) * n + z * h


def gru_seq_kernel(gx_ref, len_ref, h0_ref, whh_ref, bhh_ref,
                   out_ref, hlast_ref, h_scratch):
    """Decoder variant: emits per-step hidden states + final hidden state."""
    t_chunk = pl.program_id(1)
    tc = gx_ref.shape[0]
    Hp = h0_ref.shape[-1]

    @pl.when(t_chunk == 0)
    def _():
        h_scratch[...] = h0_ref[...]

    lens = len_ref[...][:, :1]          # (BB, 1) i32, lane-broadcast in the where
    whh = whh_ref[...]
    bhh = bhh_ref[...]
    t0 = t_chunk * tc

    @pl.loop(0, tc)
    def _(k):
        h = h_scratch[...]
        h_new = _gru_step(h, gx_ref[k], whh, bhh, Hp)
        # pack_padded_sequence semantics: advance hidden only while t < length,
        # zero the padded output positions (pad_packed_sequence default pad = 0).
        valid = (t0 + k) < lens
        h_scratch[...] = jnp.where(valid, h_new, h)
        out_ref[k] = jnp.where(valid, h_new, 0.0).astype(out_ref.dtype)

    @pl.when(t_chunk == pl.num_programs(1) - 1)
    def _():
        hlast_ref[...] = h_scratch[...].astype(hlast_ref.dtype)


def gru_last_kernel(gx_ref, len_ref, h0_ref, whh_ref, bhh_ref,
                    hlast_ref, h_scratch):
    """Encoder variant: only the final hidden state (no per-step HBM writes)."""
    t_chunk = pl.program_id(1)
    tc = gx_ref.shape[0]
    Hp = h0_ref.shape[-1]

    @pl.when(t_chunk == 0)
    def _():
        h_scratch[...] = h0_ref[...]

    lens = len_ref[...][:, :1]
    whh = whh_ref[...]
    bhh = bhh_ref[...]
    t0 = t_chunk * tc

    @pl.loop(0, tc)
    def _(k):
        h = h_scratch[...]
        h_new = _gru_step(h, gx_ref[k], whh, bhh, Hp)
        valid = (t0 + k) < lens
        h_scratch[...] = jnp.where(valid, h_new, h)

    @pl.when(t_chunk == pl.num_programs(1) - 1)
    def _():
        hlast_ref[...] = h_scratch[...].astype(hlast_ref.dtype)


def gru_forward(gx, lengths_b128, h0, w_hh, b_hh, *, emit_outputs=True):
    """gx: (T, Bp, 3*Hp) bf16; lengths_b128: (Bp, 128) i32; h0: (Bp, Hp) f32;
    w_hh: (Hp, 3*Hp) bf16; b_hh: (1, 3*Hp) f32.
    Returns (out (T,Bp,Hp) bf16 or None, h_last (Bp,Hp) f32)."""
    T, Bp, G = gx.shape
    Hp = G // 3
    budget = _vmem_budget_bytes()

    # Batch chunk: fill the MXU M dimension (target 128-256), but keep >=2 batch
    # blocks when the batch allows (v7x has 2 TensorCores sharded on the parallel axis).
    target_bb = min(256, Bp)
    if Bp >= 256:
        target_bb = min(target_bb, Bp // 2)
    BB = max(c for c in range(8, target_bb + 1, 8) if Bp % c == 0)

    # Time chunk from the VMEM byte budget (streams double-buffered):
    #   gx: 2*tc*BB*3Hp*2 B      out: 2*tc*BB*Hp*2 B (decoder only)
    #   W_hh single-buffered: Hp*3Hp*2 B    + h_scratch/h0/lengths/bias + slack.
    gx_b = gx.dtype.itemsize
    out_b = 2                                        # bf16 per-step outputs
    fixed = (Hp * 3 * Hp * w_hh.dtype.itemsize       # W_hh (Buffered(1))
             + 2 * BB * Hp * 4                       # h_scratch + h0
             + BB * 128 * 4 + 3 * Hp * 4             # lengths + b_hh
             + 2 * _MiB)                             # slack for compiler scratch
    per_step = 2 * BB * 3 * Hp * gx_b + (2 * BB * Hp * out_b if emit_outputs else 0)
    tc = int(max(1, min(T, 32, (budget - fixed) // per_step)))
    Tp = _round_up(T, tc)
    if Tp != T:
        gx = jnp.pad(gx, ((0, Tp - T), (0, 0), (0, 0)))
    n_bc, n_tc = Bp // BB, Tp // tc

    in_specs = [
        pl.BlockSpec((tc, BB, 3 * Hp), lambda i, t: (t, i, 0)),   # gx (streamed)
        _invariant_spec((BB, 128), lambda i, t: (i, 0)),          # lengths
        _invariant_spec((BB, Hp), lambda i, t: (i, 0)),           # h0
        _invariant_spec((Hp, 3 * Hp), lambda i, t: (0, 0)),       # W_hh (resident)
        _invariant_spec((1, 3 * Hp), lambda i, t: (0, 0)),        # b_hh
    ]
    hlast_spec = pl.BlockSpec((BB, Hp), lambda i, t: (i, 0))
    cparams = pltpu.CompilerParams(
        dimension_semantics=("parallel", "arbitrary"),
        vmem_limit_bytes=budget)
    scratch = [pltpu.VMEM((BB, Hp), jnp.float32)]

    if emit_outputs:
        out, h_last = pl.pallas_call(
            gru_seq_kernel,
            out_shape=(jax.ShapeDtypeStruct((Tp, Bp, Hp), jnp.bfloat16),
                       jax.ShapeDtypeStruct((Bp, Hp), jnp.float32)),
            grid_spec=pltpu.PrefetchScalarGridSpec(
                num_scalar_prefetch=0, grid=(n_bc, n_tc),
                in_specs=in_specs,
                out_specs=[pl.BlockSpec((tc, BB, Hp), lambda i, t: (t, i, 0)),
                           hlast_spec],
                scratch_shapes=scratch),
            compiler_params=cparams,
        )(gx, lengths_b128, h0, w_hh, b_hh)
        return out[:T], h_last

    h_last = pl.pallas_call(
        gru_last_kernel,
        out_shape=jax.ShapeDtypeStruct((Bp, Hp), jnp.float32),
        grid_spec=pltpu.PrefetchScalarGridSpec(
            num_scalar_prefetch=0, grid=(n_bc, n_tc),
            in_specs=in_specs, out_specs=hlast_spec,
            scratch_shapes=scratch),
        compiler_params=cparams,
    )(gx, lengths_b128, h0, w_hh, b_hh)
    return None, h_last


# --------------------------------------------- Linear + log_softmax (tiled / fused)
def proj_fused_kernel(x_ref, w_ref, b_ref, o_ref):
    """Single pass (whole padded vocab in one tile): matmul + log_softmax, no logits
    round trip through HBM."""
    logits = jnp.dot(x_ref[...], w_ref[...],
                     preferred_element_type=jnp.float32) + b_ref[...]
    m = jnp.max(logits, axis=-1, keepdims=True)
    lse = m + jnp.log(jnp.sum(jnp.exp(logits - m), axis=-1, keepdims=True))
    o_ref[...] = (logits - lse).astype(o_ref.dtype)


def proj_logits_kernel(x_ref, w_ref, b_ref, logits_ref, lse_ref, m_s, l_s):
    """Pass 1: matmul tile + online (max, sum-exp) over the vocab axis; stores bf16
    logits (f32 values are kept in-register for the running statistics)."""
    j = pl.program_id(1)

    @pl.when(j == 0)
    def _():
        m_s[...] = jnp.full_like(m_s, -jnp.inf)
        l_s[...] = jnp.zeros_like(l_s)

    logits = jnp.dot(x_ref[...], w_ref[...],
                     preferred_element_type=jnp.float32) + b_ref[...]
    logits_ref[...] = logits.astype(logits_ref.dtype)

    m_prev = m_s[...]
    m_new = jnp.maximum(m_prev, jnp.max(logits, axis=-1, keepdims=True))
    l_s[...] = l_s[...] * jnp.exp(m_prev - m_new) + jnp.sum(
        jnp.exp(logits - m_new), axis=-1, keepdims=True)
    m_s[...] = m_new

    @pl.when(j == pl.num_programs(1) - 1)
    def _():
        lse_ref[...] = jnp.broadcast_to(m_s[...] + jnp.log(l_s[...]),
                                        lse_ref.shape)


def logsoftmax_finalize_kernel(logits_ref, lse_ref, o_ref):
    """Pass 2: elementwise normalize with the per-row log-sum-exp."""
    lse = lse_ref[...][:, :1]
    o_ref[...] = (logits_ref[...].astype(jnp.float32) - lse).astype(o_ref.dtype)


def linear_log_softmax(x2d, w_hv, b_1v, *, max_tile_v=2048):
    """x2d: (N, Hp) bf16; w_hv: (Hp, Vp) bf16; b_1v: (1, Vp) f32 (padded vocab columns
    carry a very negative bias).  Returns (N, Vp) f32 log-probs."""
    N, Hp = x2d.shape
    Vp = w_hv.shape[1]
    budget = _vmem_budget_bytes()

    fused = Vp <= max_tile_v
    tile_v = Vp if fused else max(
        k for k in range(128, max_tile_v + 1, 128) if Vp % k == 0)

    def step_bytes(tn):
        x_bytes = 2 * tn * Hp * 2                              # bf16 activations
        if fused:
            return x_bytes + Hp * Vp * 2 + 2 * tn * Vp * 4 + Vp * 4
        return (x_bytes + 2 * Hp * tile_v * 2                  # bf16 weight tiles
                + 2 * tn * tile_v * 2                          # bf16 logits
                + 2 * tn * 128 * 4 + 2 * tile_v * 4)           # lse + bias

    row_cap = _round_up(N, 8)
    tile_n = 8
    for cand in (512, 384, 256, 128, 64, 32, 16, 8):
        if cand <= row_cap and step_bytes(cand) + 2 * _MiB <= budget:
            tile_n = cand
            break
    Np = _round_up(N, tile_n)
    if Np != N:
        x2d = jnp.pad(x2d, ((0, Np - N), (0, 0)))
    n_rows = Np // tile_n

    if fused:
        out = pl.pallas_call(
            proj_fused_kernel,
            out_shape=jax.ShapeDtypeStruct((Np, Vp), jnp.float32),
            grid_spec=pltpu.PrefetchScalarGridSpec(
                num_scalar_prefetch=0, grid=(n_rows,),
                in_specs=[
                    pl.BlockSpec((tile_n, Hp), lambda i: (i, 0)),
                    _invariant_spec((Hp, Vp), lambda i: (0, 0)),
                    _invariant_spec((1, Vp), lambda i: (0, 0)),
                ],
                out_specs=pl.BlockSpec((tile_n, Vp), lambda i: (i, 0))),
            compiler_params=pltpu.CompilerParams(
                dimension_semantics=("parallel",),
                vmem_limit_bytes=budget),
        )(x2d, w_hv, b_1v)
        return out[:N]

    n_vt = Vp // tile_v
    logits, lse = pl.pallas_call(
        proj_logits_kernel,
        out_shape=(jax.ShapeDtypeStruct((Np, Vp), jnp.bfloat16),
                   jax.ShapeDtypeStruct((Np, 128), jnp.float32)),
        grid_spec=pltpu.PrefetchScalarGridSpec(
            num_scalar_prefetch=0, grid=(n_rows, n_vt),
            in_specs=[
                pl.BlockSpec((tile_n, Hp), lambda i, j: (i, 0)),
                pl.BlockSpec((Hp, tile_v), lambda i, j: (0, j)),
                pl.BlockSpec((1, tile_v), lambda i, j: (0, j)),
            ],
            out_specs=[
                pl.BlockSpec((tile_n, tile_v), lambda i, j: (i, j)),
                pl.BlockSpec((tile_n, 128), lambda i, j: (i, 0)),
            ],
            scratch_shapes=[pltpu.VMEM((tile_n, 1), jnp.float32),
                            pltpu.VMEM((tile_n, 1), jnp.float32)]),
        compiler_params=pltpu.CompilerParams(
            dimension_semantics=("parallel", "arbitrary"),
            vmem_limit_bytes=budget),
    )(x2d, w_hv, b_1v)

    out = pl.pallas_call(
        logsoftmax_finalize_kernel,
        out_shape=jax.ShapeDtypeStruct((Np, Vp), jnp.float32),
        grid_spec=pltpu.PrefetchScalarGridSpec(
            num_scalar_prefetch=0, grid=(n_rows, n_vt),
            in_specs=[
                pl.BlockSpec((tile_n, tile_v), lambda i, j: (i, j)),
                pl.BlockSpec((tile_n, 128), lambda i, j: (i, 0)),
            ],
            out_specs=pl.BlockSpec((tile_n, tile_v), lambda i, j: (i, j))),
        compiler_params=pltpu.CompilerParams(
            dimension_semantics=("parallel", "parallel"),
            vmem_limit_bytes=budget),
    )(logits, lse)
    return out[:N]


# ------------------------------------------------------------ params (pre-padded)
def init_params(key, src_vocab, tgt_vocab, hidden):
    """Matmul-friendly (transposed) layout, padded once: hidden -> Hp (multiple of 128,
    gate blocks 128-aligned), vocab -> Vp.  Streamed weights/embeddings in bf16."""
    Hp = _round_up(hidden, 128)
    Vp = _round_up(tgt_vocab, 128)
    ks = jax.random.split(key, 12)
    bound = 1.0 / float(hidden) ** 0.5

    def u(k, shape):
        return jax.random.uniform(k, shape, jnp.float32, -bound, bound)

    def pad_gru_w(w):                       # (H,3H) -> (Hp,3*Hp) bf16, zeros elsewhere
        w3 = w.reshape(hidden, 3, hidden)
        out = jnp.zeros((Hp, 3, Hp), jnp.float32).at[:hidden, :, :hidden].set(w3)
        return out.reshape(Hp, 3 * Hp).astype(jnp.bfloat16)

    def pad_gru_b(b):                       # (1,3H) -> (1,3*Hp) f32
        b3 = b.reshape(1, 3, hidden)
        out = jnp.zeros((1, 3, Hp), jnp.float32).at[:, :, :hidden].set(b3)
        return out.reshape(1, 3 * Hp)

    def pad_cols(m, cols):
        return jnp.zeros(m.shape[:-1] + (cols,), m.dtype).at[..., :m.shape[-1]].set(m)

    enc_embed = jax.random.normal(ks[0], (src_vocab, hidden), jnp.float32)
    dec_embed = jax.random.normal(ks[5], (tgt_vocab, hidden), jnp.float32)
    out_w = u(ks[10], (hidden, tgt_vocab))
    out_b = u(ks[11], (1, tgt_vocab))

    return {
        # encoder
        "enc_embed": pad_cols(enc_embed, Hp).astype(jnp.bfloat16),
        "enc_w_ih": pad_gru_w(u(ks[1], (hidden, 3 * hidden))),   # x @ W_ih layout
        "enc_w_hh": pad_gru_w(u(ks[2], (hidden, 3 * hidden))),
        "enc_b_ih": pad_gru_b(u(ks[3], (1, 3 * hidden))),
        "enc_b_hh": pad_gru_b(u(ks[4], (1, 3 * hidden))),
        # decoder
        "dec_embed": pad_cols(dec_embed, Hp).astype(jnp.bfloat16),
        "dec_w_ih": pad_gru_w(u(ks[6], (hidden, 3 * hidden))),
        "dec_w_hh": pad_gru_w(u(ks[7], (hidden, 3 * hidden))),
        "dec_b_ih": pad_gru_b(u(ks[8], (1, 3 * hidden))),
        "dec_b_hh": pad_gru_b(u(ks[9], (1, 3 * hidden))),
        # Linear: weight zero-padded (bf16), bias padded with NEG_INF so padded
        # vocab columns contribute exp(~-inf)=0 to the softmax normalizer.
        "dec_out_w": jnp.zeros((Hp, Vp), jnp.float32)
                        .at[:hidden, :tgt_vocab].set(out_w).astype(jnp.bfloat16),
        "dec_out_b": jnp.full((1, Vp), NEG_INF, jnp.float32)
                        .at[:, :tgt_vocab].set(out_b),
    }


# ------------------------------------------------------------ model wrapper
@functools.partial(jax.jit, static_argnames=("tgt_vocab",))
def plain_seq2seq_forward(params, x, x_lengths, y, y_lengths, *, tgt_vocab):
    """x: (B, Tx) int32 ids, y: (B, Ty) int32 ids.  Returns ((B, Ty, V) log-probs, None)."""
    B, Tx = x.shape
    _, Ty = y.shape
    Hp = params["enc_w_hh"].shape[0]
    Vp = params["dec_out_w"].shape[1]
    Bp = _round_up(B, 8)
    pad_b = Bp - B

    # Pad batch to a sublane multiple; padded rows get length 0 (hidden stays 0).
    x_ids = jnp.pad(x, ((0, pad_b), (0, 0)))
    y_ids = jnp.pad(y, ((0, pad_b), (0, 0)))
    x_len = jnp.broadcast_to(
        jnp.pad(x_lengths.astype(jnp.int32), (0, pad_b))[:, None], (Bp, 128))
    y_len = jnp.broadcast_to(
        jnp.pad(y_lengths.astype(jnp.int32), (0, pad_b))[:, None], (Bp, 128))

    def input_proj(ids_t, embed, w_ih, b_ih):
        # Embed in time-major layout and hoist the input projection into one big
        # MXU matmul (f32 accumulation, bf16 result streamed into the GRU kernel).
        emb = jnp.take(embed, ids_t, axis=0)                     # (T, Bp, Hp) bf16
        g = jnp.dot(emb.reshape(-1, Hp), w_ih,
                    preferred_element_type=jnp.float32) + b_ih
        return g.astype(jnp.bfloat16).reshape(ids_t.shape[0], Bp, 3 * Hp)

    # ---------------- encoder (only h_last; per-step outputs never materialized) ----
    gx_enc = input_proj(x_ids.T, params["enc_embed"],
                        params["enc_w_ih"], params["enc_b_ih"])
    h0 = jnp.zeros((Bp, Hp), jnp.float32)
    _, enc_hid = gru_forward(gx_enc, x_len, h0, params["enc_w_hh"],
                             params["enc_b_hh"], emit_outputs=False)

    # ---------------- decoder --------------------------------------------------
    gx_dec = input_proj(y_ids.T, params["dec_embed"],
                        params["dec_w_ih"], params["dec_b_ih"])
    dec_out_t, _ = gru_forward(gx_dec, y_len, enc_hid, params["dec_w_hh"],
                               params["dec_b_hh"], emit_outputs=True)  # (Ty,Bp,Hp) bf16

    # Small bf16 layout transpose before the projection (see TODO at file top).
    dec_out = jnp.transpose(dec_out_t, (1, 0, 2)).reshape(Bp * Ty, Hp)
    logp = linear_log_softmax(dec_out, params["dec_out_w"], params["dec_out_b"])
    output = logp.reshape(Bp, Ty, Vp)[:B, :, :tgt_vocab]                # (B, Ty, V)
    return output, None


if __name__ == "__main__":
    key = jax.random.PRNGKey(0)
    B, Tx, Ty, H = 2, 8, 8, 32
    SRC_V, TGT_V = 37, 64

    pkey, xkey, ykey = jax.random.split(key, 3)
    params = init_params(pkey, SRC_V, TGT_V, H)

    x = jax.random.randint(xkey, (B, Tx), 0, SRC_V, dtype=jnp.int32)
    y = jax.random.randint(ykey, (B, Ty), 0, TGT_V, dtype=jnp.int32)
    x_lengths = jnp.array([Tx, 5], dtype=jnp.int32)   # max length == Tx (padded batch)
    y_lengths = jnp.array([Ty, 6], dtype=jnp.int32)

    output, attn = plain_seq2seq_forward(params, x, x_lengths, y, y_lengths,
                                         tgt_vocab=TGT_V)
    output = jax.block_until_ready(output)

    assert output.shape == (B, Ty, TGT_V)
    assert attn is None
    assert bool(jnp.all(jnp.isfinite(output)))
    # log-probabilities must exponentiate to a distribution over the target vocab
    row_sums = jnp.exp(output).sum(-1)
    assert bool(jnp.all(jnp.abs(row_sums - 1.0) < 1e-3))
    print("KERNEL_OK")
</pallas_src>

<mosaic_0001>
module attributes {stable_mosaic.version = 11 : i64} {
  func.func @gru_last_kernel(%arg0: i32, %arg1: i32, %arg2: memref<8x8x384xbf16, #tpu.memory_space<vmem>>, %arg3: memref<8x128xi32, #tpu.memory_space<vmem>>, %arg4: memref<8x128xf32, #tpu.memory_space<vmem>>, %arg5: memref<128x384xbf16, #tpu.memory_space<vmem>>, %arg6: memref<1x384xf32, #tpu.memory_space<vmem>>, %arg7: memref<8x128xf32, #tpu.memory_space<vmem>>, %arg8: memref<8x128xf32, #tpu.memory_space<vmem>>) attributes {dimension_semantics = [#tpu.dimension_semantics<parallel>, #tpu.dimension_semantics<arbitrary>], iteration_bounds = array<i64: 1, 1>, scalar_prefetch = 0 : i64, scratch_operands = 1 : i64, tpu.core_type = #tpu.core_type<tc>, window_params = [{transform_indices = @transform_0, window_bounds = array<i64: 8, 8, 384>}, {pipeline_mode = #tpu.pipeline_mode<synchronous>, transform_indices = @transform_1, window_bounds = array<i64: 8, 128>}, {pipeline_mode = #tpu.pipeline_mode<synchronous>, transform_indices = @transform_2, window_bounds = array<i64: 8, 128>}, {pipeline_mode = #tpu.pipeline_mode<synchronous>, transform_indices = @transform_3, window_bounds = array<i64: 128, 384>}, {pipeline_mode = #tpu.pipeline_mode<synchronous>, transform_indices = @transform_4, window_bounds = array<i64: 1, 384>}, {transform_indices = @transform_5, window_bounds = array<i64: 8, 128>}]} {
    %c0_i32 = arith.constant 0 : i32
    %0 = arith.cmpi eq, %arg1, %c0_i32 : i32
    %1 = arith.extui %0 : i1 to i32
    %c0_i32_0 = arith.constant 0 : i32
    %2 = arith.cmpi ne, %1, %c0_i32_0 : i32
    scf.if %2 {
      %c0_11 = arith.constant 0 : index
      %c0_12 = arith.constant 0 : index
      %12 = vector.load %arg4[%c0_11, %c0_12] : memref<8x128xf32, #tpu.memory_space<vmem>>, vector<8x128xf32>
      %c0_13 = arith.constant 0 : index
      %c0_14 = arith.constant 0 : index
      %13 = vector.load %arg8[%c0_13, %c0_14] : memref<8x128xf32, #tpu.memory_space<vmem>>, vector<8x128xf32>
      tpu.vector_store %arg8[%c0_13, %c0_14], %12 {strides = array<i32>} : memref<8x128xf32, #tpu.memory_space<vmem>>, vector<8x128xf32>,
    } else {
    }
    %c0 = arith.constant 0 : index
    %c0_1 = arith.constant 0 : index
    %3 = vector.load %arg3[%c0, %c0_1] : memref<8x128xi32, #tpu.memory_space<vmem>>, vector<8x128xi32>
    %4 = vector.extract_strided_slice %3 {offsets = [0, 0], sizes = [8, 1], strides = [1, 1]} : vector<8x128xi32> to vector<8x1xi32>
    %c0_2 = arith.constant 0 : index
    %c0_3 = arith.constant 0 : index
    %5 = vector.load %arg5[%c0_2, %c0_3] : memref<128x384xbf16, #tpu.memory_space<vmem>>, vector<128x384xbf16>
    %c0_4 = arith.constant 0 : index
    %c0_5 = arith.constant 0 : index
    %6 = vector.load %arg6[%c0_4, %c0_5] : memref<1x384xf32, #tpu.memory_space<vmem>>, vector<1x384xf32>
    %c8_i32 = arith.constant 8 : i32
    %7 = arith.muli %arg1, %c8_i32 : i32
    %c0_i32_6 = arith.constant 0 : i32
    %c8_i32_7 = arith.constant 8 : i32
    %8 = arith.addi %c0_i32_6, %c8_i32_7 : i32
    %c1_i32 = arith.constant 1 : i32
    scf.for %arg9 = %c0_i32_6 to %8 step %c1_i32  : i32 {
      %c1_i32_11 = arith.constant 1 : i32
      %12 = arith.muli %arg9, %c1_i32_11 : i32
      %c0_i32_12 = arith.constant 0 : i32
      %13 = arith.addi %c0_i32_12, %12 : i32
      %c0_13 = arith.constant 0 : index
      %c0_14 = arith.constant 0 : index
      %14 = vector.load %arg8[%c0_13, %c0_14] : memref<8x128xf32, #tpu.memory_space<vmem>>, vector<8x128xf32>
      %15 = arith.index_cast %13 : i32 to index
      %c0_15 = arith.constant 0 : index
      %c0_16 = arith.constant 0 : index
      %16 = vector.load %arg2[%15, %c0_15, %c0_16] : memref<8x8x384xbf16, #tpu.memory_space<vmem>>, vector<1x8x384xbf16>
      %17 = vector.shape_cast %16 : vector<1x8x384xbf16> to vector<8x384xbf16>
      %18 = arith.truncf %14 : vector<8x128xf32> to vector<8x128xbf16>
      %cst = arith.constant dense<0.000000e+00> : vector<8x384xf32>
      %19 = tpu.matmul %18, %5, %cst {dimension_numbers = #tpu.dot_dimension_numbers<[1], [0], [0], [1], [0, 0, 1, 1], [], []>} : vector<8x128xbf16>, vector<128x384xbf16>, vector<8x384xf32> -> vector<8x384xf32>
      %20 = vector.broadcast %6 : vector<1x384xf32> to vector<8x384xf32>
      %21 = arith.addf %19, %20 : vector<8x384xf32>
      %22 = arith.extf %17 : vector<8x384xbf16> to vector<8x384xf32>
      %23 = vector.extract_strided_slice %22 {offsets = [0, 0], sizes = [8, 128], strides = [1, 1]} : vector<8x384xf32> to vector<8x128xf32>
      %24 = vector.extract_strided_slice %21 {offsets = [0, 0], sizes = [8, 128], strides = [1, 1]} : vector<8x384xf32> to vector<8x128xf32>
      %25 = arith.addf %23, %24 : vector<8x128xf32>
      %26 = arith.negf %25 : vector<8x128xf32>
      %27 = math.exp %26 : vector<8x128xf32>
      %cst_17 = arith.constant 1.000000e+00 : f32
      %28 = vector.broadcast %cst_17 : f32 to vector<8x128xf32>
      %29 = arith.addf %28, %27 : vector<8x128xf32>
      %30 = arith.divf %28, %29 : vector<8x128xf32>
      %31 = vector.extract_strided_slice %22 {offsets = [0, 128], sizes = [8, 128], strides = [1, 1]} : vector<8x384xf32> to vector<8x128xf32>
      %32 = vector.extract_strided_slice %21 {offsets = [0, 128], sizes = [8, 128], strides = [1, 1]} : vector<8x384xf32> to vector<8x128xf32>
      %33 = arith.addf %31, %32 : vector<8x128xf32>
      %34 = arith.negf %33 : vector<8x128xf32>
      %35 = math.exp %34 : vector<8x128xf32>
      %cst_18 = arith.constant 1.000000e+00 : f32
      %36 = vector.broadcast %cst_18 : f32 to vector<8x128xf32>
      %37 = arith.addf %36, %35 : vector<8x128xf32>
      %38 = arith.divf %36, %37 : vector<8x128xf32>
      %39 = vector.extract_strided_slice %22 {offsets = [0, 256], sizes = [8, 128], strides = [1, 1]} : vector<8x384xf32> to vector<8x128xf32>
      %40 = vector.extract_strided_slice %21 {offsets = [0, 256], sizes = [8, 128], strides = [1, 1]} : vector<8x384xf32> to vector<8x128xf32>
      %41 = arith.mulf %30, %40 : vector<8x128xf32>
      %42 = arith.addf %39, %41 : vector<8x128xf32>
      %43 = math.tanh %42 : vector<8x128xf32>
      %cst_19 = arith.constant 1.000000e+00 : f32
      %44 = vector.broadcast %cst_19 : f32 to vector<8x128xf32>
      %45 = arith.subf %44, %38 : vector<8x128xf32>
      %46 = arith.mulf %45, %43 : vector<8x128xf32>
      %47 = arith.mulf %38, %14 : vector<8x128xf32>
      %48 = arith.addf %46, %47 : vector<8x128xf32>
      %49 = arith.addi %7, %13 : i32
      %50 = vector.broadcast %49 : i32 to vector<8x1xi32>
      %51 = arith.cmpi slt, %50, %4 : vector<8x1xi32>
      %52 = vector.shape_cast %51 : vector<8x1xi1> to vector<8x1xi1>
      %53 = vector.broadcast %52 : vector<8x1xi1> to vector<8x128xi1>
      %54 = arith.select %53, %48, %14 : vector<8x128xi1>, vector<8x128xf32>
      %c0_20 = arith.constant 0 : index
      %c0_21 = arith.constant 0 : index
      %55 = vector.load %arg8[%c0_20, %c0_21] : memref<8x128xf32, #tpu.memory_space<vmem>>, vector<8x128xf32>
      tpu.vector_store %arg8[%c0_20, %c0_21], %54 {strides = array<i32>} : memref<8x128xf32, #tpu.memory_space<vmem>>, vector<8x128xf32>,
    }
    %c8_i32_8 = arith.constant 8 : i32
    %c0_i32_9 = arith.constant 0 : i32
    %9 = arith.cmpi eq, %arg1, %c0_i32_9 : i32
    %10 = arith.extui %9 : i1 to i32
    %c0_i32_10 = arith.constant 0 : i32
    %11 = arith.cmpi ne, %10, %c0_i32_10 : i32
    scf.if %11 {
      %c0_11 = arith.constant 0 : index
      %c0_12 = arith.constant 0 : index
      %12 = vector.load %arg8[%c0_11, %c0_12] : memref<8x128xf32, #tpu.memory_space<vmem>>, vector<8x128xf32>
      %c0_13 = arith.constant 0 : index
      %c0_14 = arith.constant 0 : index
      %13 = vector.load %arg7[%c0_13, %c0_14] : memref<8x128xf32, #tpu.memory_space<vmem>>, vector<8x128xf32>
      tpu.vector_store %arg7[%c0_13, %c0_14], %12 {strides = array<i32>} : memref<8x128xf32, #tpu.memory_space<vmem>>, vector<8x128xf32>,
    } else {
    }
    return
  }
  func.func @transform_0(%arg0: i32, %arg1: i32) -> (i32, i32, i32) {
    %c0_i32 = arith.constant 0 : i32
    %c0_i32_0 = arith.constant 0 : i32
    return %arg1, %arg0, %c0_i32 : i32, i32, i32
  }
  func.func @transform_1(%arg0: i32, %arg1: i32) -> (i32, i32) {
    %c0_i32 = arith.constant 0 : i32
    %c0_i32_0 = arith.constant 0 : i32
    return %arg0, %c0_i32 : i32, i32
  }
  func.func @transform_2(%arg0: i32, %arg1: i32) -> (i32, i32) {
    %c0_i32 = arith.constant 0 : i32
    %c0_i32_0 = arith.constant 0 : i32
    return %arg0, %c0_i32 : i32, i32
  }
  func.func @transform_3(%arg0: i32, %arg1: i32) -> (i32, i32) {
    %c0_i32 = arith.constant 0 : i32
    %c0_i32_0 = arith.constant 0 : i32
    %c0_i32_1 = arith.constant 0 : i32
    return %c0_i32, %c0_i32_0 : i32, i32
  }
  func.func @transform_4(%arg0: i32, %arg1: i32) -> (i32, i32) {
    %c0_i32 = arith.constant 0 : i32
    %c0_i32_0 = arith.constant 0 : i32
    %c0_i32_1 = arith.constant 0 : i32
    return %c0_i32, %c0_i32_0 : i32, i32
  }
  func.func @transform_5(%arg0: i32, %arg1: i32) -> (i32, i32) {
    %c0_i32 = arith.constant 0 : i32
    %c0_i32_0 = arith.constant 0 : i32
    return %arg0, %c0_i32 : i32, i32
  }
}

module attributes {stable_mosaic.version = 11 : i64} {
  func.func @gru_seq_kernel(%arg0: i32, %arg1: i32, %arg2: memref<8x8x384xbf16, #tpu.memory_space<vmem>>, %arg3: memref<8x128xi32, #tpu.memory_space<vmem>>, %arg4: memref<8x128xf32, #tpu.memory_space<vmem>>, %arg5: memref<128x384xbf16, #tpu.memory_space<vmem>>, %arg6: memref<1x384xf32, #tpu.memory_space<vmem>>, %arg7: memref<8x8x128xbf16, #tpu.memory_space<vmem>>, %arg8: memref<8x128xf32, #tpu.memory_space<vmem>>, %arg9: memref<8x128xf32, #tpu.memory_space<vmem>>) attributes {dimension_semantics = [#tpu.dimension_semantics<parallel>, #tpu.dimension_semantics<arbitrary>], iteration_bounds = array<i64: 1, 1>, scalar_prefetch = 0 : i64, scratch_operands = 1 : i64, tpu.core_type = #tpu.core_type<tc>, window_params = [{transform_indices = @transform_0, window_bounds = array<i64: 8, 8, 384>}, {pipeline_mode = #tpu.pipeline_mode<synchronous>, transform_indices = @transform_1, window_bounds = array<i64: 8, 128>}, {pipeline_mode = #tpu.pipeline_mode<synchronous>, transform_indices = @transform_2, window_bounds = array<i64: 8, 128>}, {pipeline_mode = #tpu.pipeline_mode<synchronous>, transform_indices = @transform_3, window_bounds = array<i64: 128, 384>}, {pipeline_mode = #tpu.pipeline_mode<synchronous>, transform_indices = @transform_4, window_bounds = array<i64: 1, 384>}, {transform_indices = @transform_5, window_bounds = array<i64: 8, 8, 128>}, {transform_indices = @transform_6, window_bounds = array<i64: 8, 128>}]} {
    %c0_i32 = arith.constant 0 : i32
    %0 = arith.cmpi eq, %arg1, %c0_i32 : i32
    %1 = arith.extui %0 : i1 to i32
    %c0_i32_0 = arith.constant 0 : i32
    %2 = arith.cmpi ne, %1, %c0_i32_0 : i32
    scf.if %2 {
      %c0_11 = arith.constant 0 : index
      %c0_12 = arith.constant 0 : index
      %12 = vector.load %arg4[%c0_11, %c0_12] : memref<8x128xf32, #tpu.memory_space<vmem>>, vector<8x128xf32>
      %c0_13 = arith.constant 0 : index
      %c0_14 = arith.constant 0 : index
      %13 = vector.load %arg9[%c0_13, %c0_14] : memref<8x128xf32, #tpu.memory_space<vmem>>, vector<8x128xf32>
      tpu.vector_store %arg9[%c0_13, %c0_14], %12 {strides = array<i32>} : memref<8x128xf32, #tpu.memory_space<vmem>>, vector<8x128xf32>,
    } else {
    }
    %c0 = arith.constant 0 : index
    %c0_1 = arith.constant 0 : index
    %3 = vector.load %arg3[%c0, %c0_1] : memref<8x128xi32, #tpu.memory_space<vmem>>, vector<8x128xi32>
    %4 = vector.extract_strided_slice %3 {offsets = [0, 0], sizes = [8, 1], strides = [1, 1]} : vector<8x128xi32> to vector<8x1xi32>
    %c0_2 = arith.constant 0 : index
    %c0_3 = arith.constant 0 : index
    %5 = vector.load %arg5[%c0_2, %c0_3] : memref<128x384xbf16, #tpu.memory_space<vmem>>, vector<128x384xbf16>
    %c0_4 = arith.constant 0 : index
    %c0_5 = arith.constant 0 : index
    %6 = vector.load %arg6[%c0_4, %c0_5] : memref<1x384xf32, #tpu.memory_space<vmem>>, vector<1x384xf32>
    %c8_i32 = arith.constant 8 : i32
    %7 = arith.muli %arg1, %c8_i32 : i32
    %c0_i32_6 = arith.constant 0 : i32
    %c8_i32_7 = arith.constant 8 : i32
    %8 = arith.addi %c0_i32_6, %c8_i32_7 : i32
    %c1_i32 = arith.constant 1 : i32
    scf.for %arg10 = %c0_i32_6 to %8 step %c1_i32  : i32 {
      %c1_i32_11 = arith.constant 1 : i32
      %12 = arith.muli %arg10, %c1_i32_11 : i32
      %c0_i32_12 = arith.constant 0 : i32
      %13 = arith.addi %c0_i32_12, %12 : i32
      %c0_13 = arith.constant 0 : index
      %c0_14 = arith.constant 0 : index
      %14 = vector.load %arg9[%c0_13, %c0_14] : memref<8x128xf32, #tpu.memory_space<vmem>>, vector<8x128xf32>
      %15 = arith.index_cast %13 : i32 to index
      %c0_15 = arith.constant 0 : index
      %c0_16 = arith.constant 0 : index
      %16 = vector.load %arg2[%15, %c0_15, %c0_16] : memref<8x8x384xbf16, #tpu.memory_space<vmem>>, vector<1x8x384xbf16>
      %17 = vector.shape_cast %16 : vector<1x8x384xbf16> to vector<8x384xbf16>
      %18 = arith.truncf %14 : vector<8x128xf32> to vector<8x128xbf16>
      %cst = arith.constant dense<0.000000e+00> : vector<8x384xf32>
      %19 = tpu.matmul %18, %5, %cst {dimension_numbers = #tpu.dot_dimension_numbers<[1], [0], [0], [1], [0, 0, 1, 1], [], []>} : vector<8x128xbf16>, vector<128x384xbf16>, vector<8x384xf32> -> vector<8x384xf32>
      %20 = vector.broadcast %6 : vector<1x384xf32> to vector<8x384xf32>
      %21 = arith.addf %19, %20 : vector<8x384xf32>
      %22 = arith.extf %17 : vector<8x384xbf16> to vector<8x384xf32>
      %23 = vector.extract_strided_slice %22 {offsets = [0, 0], sizes = [8, 128], strides = [1, 1]} : vector<8x384xf32> to vector<8x128xf32>
      %24 = vector.extract_strided_slice %21 {offsets = [0, 0], sizes = [8, 128], strides = [1, 1]} : vector<8x384xf32> to vector<8x128xf32>
      %25 = arith.addf %23, %24 : vector<8x128xf32>
      %26 = arith.negf %25 : vector<8x128xf32>
      %27 = math.exp %26 : vector<8x128xf32>
      %cst_17 = arith.constant 1.000000e+00 : f32
      %28 = vector.broadcast %cst_17 : f32 to vector<8x128xf32>
      %29 = arith.addf %28, %27 : vector<8x128xf32>
      %30 = arith.divf %28, %29 : vector<8x128xf32>
      %31 = vector.extract_strided_slice %22 {offsets = [0, 128], sizes = [8, 128], strides = [1, 1]} : vector<8x384xf32> to vector<8x128xf32>
      %32 = vector.extract_strided_slice %21 {offsets = [0, 128], sizes = [8, 128], strides = [1, 1]} : vector<8x384xf32> to vector<8x128xf32>
      %33 = arith.addf %31, %32 : vector<8x128xf32>
      %34 = arith.negf %33 : vector<8x128xf32>
      %35 = math.exp %34 : vector<8x128xf32>
      %cst_18 = arith.constant 1.000000e+00 : f32
      %36 = vector.broadcast %cst_18 : f32 to vector<8x128xf32>
      %37 = arith.addf %36, %35 : vector<8x128xf32>
      %38 = arith.divf %36, %37 : vector<8x128xf32>
      %39 = vector.extract_strided_slice %22 {offsets = [0, 256], sizes = [8, 128], strides = [1, 1]} : vector<8x384xf32> to vector<8x128xf32>
      %40 = vector.extract_strided_slice %21 {offsets = [0, 256], sizes = [8, 128], strides = [1, 1]} : vector<8x384xf32> to vector<8x128xf32>
      %41 = arith.mulf %30, %40 : vector<8x128xf32>
      %42 = arith.addf %39, %41 : vector<8x128xf32>
      %43 = math.tanh %42 : vector<8x128xf32>
      %cst_19 = arith.constant 1.000000e+00 : f32
      %44 = vector.broadcast %cst_19 : f32 to vector<8x128xf32>
      %45 = arith.subf %44, %38 : vector<8x128xf32>
      %46 = arith.mulf %45, %43 : vector<8x128xf32>
      %47 = arith.mulf %38, %14 : vector<8x128xf32>
      %48 = arith.addf %46, %47 : vector<8x128xf32>
      %49 = arith.addi %7, %13 : i32
      %50 = vector.broadcast %49 : i32 to vector<8x1xi32>
      %51 = arith.cmpi slt, %50, %4 : vector<8x1xi32>
      %52 = vector.shape_cast %51 : vector<8x1xi1> to vector<8x1xi1>
      %53 = vector.broadcast %52 : vector<8x1xi1> to vector<8x128xi1>
      %54 = arith.select %53, %48, %14 : vector<8x128xi1>, vector<8x128xf32>
      %c0_20 = arith.constant 0 : index
      %c0_21 = arith.constant 0 : index
      %55 = vector.load %arg9[%c0_20, %c0_21] : memref<8x128xf32, #tpu.memory_space<vmem>>, vector<8x128xf32>
      tpu.vector_store %arg9[%c0_20, %c0_21], %54 {strides = array<i32>} : memref<8x128xf32, #tpu.memory_space<vmem>>, vector<8x128xf32>,
      %cst_22 = arith.constant 0.000000e+00 : f32
      %56 = vector.shape_cast %51 : vector<8x1xi1> to vector<8x1xi1>
      %57 = vector.broadcast %56 : vector<8x1xi1> to vector<8x128xi1>
      %58 = vector.broadcast %cst_22 : f32 to vector<8x128xf32>
      %59 = arith.select %57, %48, %58 : vector<8x128xi1>, vector<8x128xf32>
      %60 = arith.truncf %59 : vector<8x128xf32> to vector<8x128xbf16>
      %61 = arith.index_cast %13 : i32 to index
      %c0_23 = arith.constant 0 : index
      %c0_24 = arith.constant 0 : index
      %62 = vector.load %arg7[%61, %c0_23, %c0_24] : memref<8x8x128xbf16, #tpu.memory_space<vmem>>, vector<1x8x128xbf16>
      %63 = vector.shape_cast %62 : vector<1x8x128xbf16> to vector<8x128xbf16>
      %64 = vector.shape_cast %60 : vector<8x128xbf16> to vector<1x8x128xbf16>
      tpu.vector_store %arg7[%61, %c0_23, %c0_24], %64 {strides = array<i32>} : memref<8x8x128xbf16, #tpu.memory_space<vmem>>, vector<1x8x128xbf16>,
    }
    %c8_i32_8 = arith.constant 8 : i32
    %c0_i32_9 = arith.constant 0 : i32
    %9 = arith.cmpi eq, %arg1, %c0_i32_9 : i32
    %10 = arith.extui %9 : i1 to i32
    %c0_i32_10 = arith.constant 0 : i32
    %11 = arith.cmpi ne, %10, %c0_i32_10 : i32
    scf.if %11 {
      %c0_11 = arith.constant 0 : index
      %c0_12 = arith.constant 0 : index
      %12 = vector.load %arg9[%c0_11, %c0_12] : memref<8x128xf32, #tpu.memory_space<vmem>>, vector<8x128xf32>
      %c0_13 = arith.constant 0 : index
      %c0_14 = arith.constant 0 : index
      %13 = vector.load %arg8[%c0_13, %c0_14] : memref<8x128xf32, #tpu.memory_space<vmem>>, vector<8x128xf32>
      tpu.vector_store %arg8[%c0_13, %c0_14], %12 {strides = array<i32>} : memref<8x128xf32, #tpu.memory_space<vmem>>, vector<8x128xf32>,
    } else {
    }
    return
  }
  func.func @transform_0(%arg0: i32, %arg1: i32) -> (i32, i32, i32) {
    %c0_i32 = arith.constant 0 : i32
    %c0_i32_0 = arith.constant 0 : i32
    return %arg1, %arg0, %c0_i32 : i32, i32, i32
  }
  func.func @transform_1(%arg0: i32, %arg1: i32) -> (i32, i32) {
    %c0_i32 = arith.constant 0 : i32
    %c0_i32_0 = arith.constant 0 : i32
    return %arg0, %c0_i32 : i32, i32
  }
  func.func @transform_2(%arg0: i32, %arg1: i32) -> (i32, i32) {
    %c0_i32 = arith.constant 0 : i32
    %c0_i32_0 = arith.constant 0 : i32
    return %arg0, %c0_i32 : i32, i32
  }
  func.func @transform_3(%arg0: i32, %arg1: i32) -> (i32, i32) {
    %c0_i32 = arith.constant 0 : i32
    %c0_i32_0 = arith.constant 0 : i32
    %c0_i32_1 = arith.constant 0 : i32
    return %c0_i32, %c0_i32_0 : i32, i32
  }
  func.func @transform_4(%arg0: i32, %arg1: i32) -> (i32, i32) {
    %c0_i32 = arith.constant 0 : i32
    %c0_i32_0 = arith.constant 0 : i32
    %c0_i32_1 = arith.constant 0 : i32
    return %c0_i32, %c0_i32_0 : i32, i32
  }
  func.func @transform_5(%arg0: i32, %arg1: i32) -> (i32, i32, i32) {
    %c0_i32 = arith.constant 0 : i32
    %c0_i32_0 = arith.constant 0 : i32
    return %arg1, %arg0, %c0_i32 : i32, i32, i32
  }
  func.func @transform_6(%arg0: i32, %arg1: i32) -> (i32, i32) {
    %c0_i32 = arith.constant 0 : i32
    %c0_i32_0 = arith.constant 0 : i32
    return %arg0, %c0_i32 : i32, i32
  }
}

module attributes {stable_mosaic.version = 11 : i64} {
  func.func @proj_fused_kernel(%arg0: i32, %arg1: memref<64x128xbf16, #tpu.memory_space<vmem>>, %arg2: memref<128x128xbf16, #tpu.memory_space<vmem>>, %arg3: memref<1x128xf32, #tpu.memory_space<vmem>>, %arg4: memref<64x128xf32, #tpu.memory_space<vmem>>) attributes {dimension_semantics = [#tpu.dimension_semantics<parallel>], iteration_bounds = array<i64: 1>, scalar_prefetch = 0 : i64, scratch_operands = 0 : i64, tpu.core_type = #tpu.core_type<tc>, window_params = [{transform_indices = @transform_0, window_bounds = array<i64: 64, 128>}, {pipeline_mode = #tpu.pipeline_mode<synchronous>, transform_indices = @transform_1, window_bounds = array<i64: 128, 128>}, {pipeline_mode = #tpu.pipeline_mode<synchronous>, transform_indices = @transform_2, window_bounds = array<i64: 1, 128>}, {transform_indices = @transform_3, window_bounds = array<i64: 64, 128>}]} {
    %c0 = arith.constant 0 : index
    %c0_0 = arith.constant 0 : index
    %0 = vector.load %arg1[%c0, %c0_0] : memref<64x128xbf16, #tpu.memory_space<vmem>>, vector<64x128xbf16>
    %c0_1 = arith.constant 0 : index
    %c0_2 = arith.constant 0 : index
    %1 = vector.load %arg2[%c0_1, %c0_2] : memref<128x128xbf16, #tpu.memory_space<vmem>>, vector<128x128xbf16>
    %cst = arith.constant dense<0.000000e+00> : vector<64x128xf32>
    %2 = tpu.matmul %0, %1, %cst {dimension_numbers = #tpu.dot_dimension_numbers<[1], [0], [0], [1], [0, 0, 1, 1], [], []>} : vector<64x128xbf16>, vector<128x128xbf16>, vector<64x128xf32> -> vector<64x128xf32>
    %c0_3 = arith.constant 0 : index
    %c0_4 = arith.constant 0 : index
    %3 = vector.load %arg3[%c0_3, %c0_4] : memref<1x128xf32, #tpu.memory_space<vmem>>, vector<1x128xf32>
    %4 = vector.broadcast %3 : vector<1x128xf32> to vector<64x128xf32>
    %5 = arith.addf %2, %4 : vector<64x128xf32>
    %cst_5 = arith.constant dense<0xFF800000> : vector<64xf32>
    %6 = vector.multi_reduction <maximumf>, %5, %cst_5 [1] : vector<64x128xf32> to vector<64xf32>
    %7 = vector.shape_cast %6 : vector<64xf32> to vector<64x1xf32>
    %8 = vector.broadcast %7 : vector<64x1xf32> to vector<64x128xf32>
    %9 = arith.subf %5, %8 : vector<64x128xf32>
    %10 = math.exp %9 : vector<64x128xf32>
    %cst_6 = arith.constant dense<0.000000e+00> : vector<64xf32>
    %11 = vector.multi_reduction <add>, %10, %cst_6 [1] : vector<64x128xf32> to vector<64xf32>
    %12 = vector.shape_cast %11 : vector<64xf32> to vector<64x1xf32>
    %13 = math.log %12 : vector<64x1xf32>
    %14 = arith.addf %7, %13 : vector<64x1xf32>
    %15 = vector.broadcast %14 : vector<64x1xf32> to vector<64x128xf32>
    %16 = arith.subf %5, %15 : vector<64x128xf32>
    %c0_7 = arith.constant 0 : index
    %c0_8 = arith.constant 0 : index
    %17 = vector.load %arg4[%c0_7, %c0_8] : memref<64x128xf32, #tpu.memory_space<vmem>>, vector<64x128xf32>
    tpu.vector_store %arg4[%c0_7, %c0_8], %16 {strides = array<i32>} : memref<64x128xf32, #tpu.memory_space<vmem>>, vector<64x128xf32>,
    return
  }
  func.func @transform_0(%arg0: i32) -> (i32, i32) {
    %c0_i32 = arith.constant 0 : i32
    %c0_i32_0 = arith.constant 0 : i32
    return %arg0, %c0_i32 : i32, i32
  }
  func.func @transform_1(%arg0: i32) -> (i32, i32) {
    %c0_i32 = arith.constant 0 : i32
    %c0_i32_0 = arith.constant 0 : i32
    %c0_i32_1 = arith.constant 0 : i32
    return %c0_i32, %c0_i32_0 : i32, i32
  }
  func.func @transform_2(%arg0: i32) -> (i32, i32) {
    %c0_i32 = arith.constant 0 : i32
    %c0_i32_0 = arith.constant 0 : i32
    %c0_i32_1 = arith.constant 0 : i32
    return %c0_i32, %c0_i32_0 : i32, i32
  }
  func.func @transform_3(%arg0: i32) -> (i32, i32) {
    %c0_i32 = arith.constant 0 : i32
    %c0_i32_0 = arith.constant 0 : i32
    return %arg0, %c0_i32 : i32, i32
  }
}

</mosaic_0001>

<bundles_post_ra>
// kernel: plain_seq2seq_forward.4
= control target key start
LH: loop header
LB: loop body
LE: loop exit
PB: predicated region body
PF: predicated region fallthrough
CT: control target
= control target key end

     0   :  { %12 = vsyncpa [#allocation4], 0  ;;  %s699_s13 = smov 0   ;;  %s786_s0 = inlined_call_operand.vmem [shape: bf16[8,8,384], index: 0, kind: input, shape index: {}]   ;;  %s787_s1 = inlined_call_operand.vmem [shape: s32[8,128], index: 1, kind: input, shape index: {}]   ;;  %s788_s2 = inlined_call_operand.vmem [shape: f32[8,128], index: 2, kind: input, shape index: {}]   ;;  %s789_s3 = inlined_call_operand.vmem [shape: bf16[128,384], index: 3, kind: input, shape index: {}]   ;;  %s790_s4 = inlined_call_operand.vmem [shape: f32[1,384], index: 4, kind: input, shape index: {}]   ;;  %s791_s5 = inlined_call_operand.vmem [shape: bf16[8,8,128], index: 5, kind: output, shape index: {0}]   ;;  %s792_s6 = inlined_call_operand.hbm [shape: f32[8,128], index: 6, kind: output, shape index: {1}]  }
   0x1   :  { %v28_v0 = vld [vmem:[%s788_s2] sm:$0xff]  ;;  %v542_v3 = vld [vmem:[%s789_s3 + $0x8] sm:$0xf]  ;;  %v547_v4 = vld [vmem:[%s789_s3 + $0xc] sm:$0xff] }
   0x2   :  { %v532_v1 = vld [vmem:[%s787_s1] sm:$0xff]  ;;  %29 = vst [vmem:[#allocation2] sm:$0xff] %v28_v0  ;;  %v552_v5 = vld [vmem:[%s789_s3 + $0x14] sm:$0xf]  ;;  %v557_v6 = vld [vmem:[%s789_s3 + $0x18] sm:$0xff] }
   0x3   :  { %v537_v2 = vld [vmem:[%s789_s3] sm:$0xff]  ;;  %v572_v9 = vld [vmem:[%s789_s3 + $0x2c] sm:$0xf]  ;;  %v577_v10 = vld [vmem:[%s789_s3 + $0x30] sm:$0xff] }
   0x4   :  { %v562_v7 = vld [vmem:[%s789_s3 + $0x20] sm:$0xf]  ;;  %v567_v8 = vld [vmem:[%s789_s3 + $0x24] sm:$0xff]  ;;  %v582_v11 = vld [vmem:[%s789_s3 + $0x38] sm:$0xf] }
   0x5   :  { %v587_v12 = vld [vmem:[%s789_s3 + $0x3c] sm:$0xff]  ;;  %v592_v13 = vld [vmem:[%s789_s3 + $0x44] sm:$0xf]  ;;  %v597_v14 = vld [vmem:[%s789_s3 + $0x48] sm:$0xff] }
   0x6   :  { %v602_v15 = vld [vmem:[%s789_s3 + $0x50] sm:$0xf]  ;;  %v607_v16 = vld [vmem:[%s789_s3 + $0x54] sm:$0xff]  ;;  %v612_v17 = vld [vmem:[%s789_s3 + $0x5c] sm:$0xf] }
   0x7   :  { %v617_v18 = vld [vmem:[%s789_s3 + $0x60] sm:$0xff]  ;;  %v622_v19 = vld [vmem:[%s789_s3 + $0x68] sm:$0xf]  ;;  %v627_v20 = vld [vmem:[%s789_s3 + $0x6c] sm:$0xff] }
   0x8   :  { %v632_v21 = vld [vmem:[%s789_s3 + $0x74] sm:$0xf]  ;;  %v637_v22 = vld [vmem:[%s789_s3 + $0x78] sm:$0xff]  ;;  %v642_v23 = vld [vmem:[%s789_s3 + $0x80] sm:$0xf] }
   0x9   :  { %v647_v24 = vld [vmem:[%s789_s3 + $0x84] sm:$0xff]  ;;  %v652_v25 = vld [vmem:[%s789_s3 + $0x8c] sm:$0xf]  ;;  %v657_v26 = vld [vmem:[%s789_s3 + $0x90] sm:$0xff] }
   0xa   :  { %v662_v27 = vld [vmem:[%s789_s3 + $0x98] sm:$0xf]  ;;  %v667_v28 = vld [vmem:[%s789_s3 + $0x9c] sm:$0xff]  ;;  %v672_v29 = vld [vmem:[%s789_s3 + $0xa4] sm:$0xf] }
   0xb   :  { %v677_v30 = vld [vmem:[%s789_s3 + $0xa8] sm:$0xff]  ;;  %v682_v31 = vld [vmem:[%s789_s3 + $0xb0] sm:$0xf]  ;;  %v687_v32 = vld [vmem:[%s789_s3 + $0xb4] sm:$0xff] }
   0xc   :  { %v692_v33 = vld [vmem:[%s789_s3 + $0xbc] sm:$0xf]  ;;  %v697_v34 = vld [vmem:[%s790_s4] sm:$0x7] }
   0xd LB: > { %v376_v35 = vcombine.high %v537_v2, %v547_v4  ;;  %v375_v36 = vcombine.low %v537_v2, %v547_v4  ;;  %v379_v37 = vcombine.high %v557_v6, %v567_v8  ;;  %v378_v38 = vcombine.low %v557_v6, %v567_v8  ;;  %v752_v62 = vld [vmem:[#allocation2] sm:$0xff]  ;;  %s402_s3 = smul.u32 12, %s485_s13  ;;  %s401_s16 = sshll.u32 %s485_s13, 2  ;;  %s485_s13 = sphi %s699_s13, %s70_s13  }
   0xe   : > { %v377_v39 = vcombine.low %v542_v3, %v552_v5  ;;  %v382_v40 = vcombine.high %v577_v10, %v587_v12  ;;  %v487_v41 = vmov 0.0   ;;  %v380_v42 = vcombine.low %v562_v7, %v572_v9  ;;  %s340_s19 = scalar_lea.vmem %s791_s5, %s401_s16 }
   0xf   : > { %222 = vmatprep.subr.bf16.mxu0 %v376_v35  ;;  %412 = vmatprep.subr.bf16.mxu1 %v487_v41  ;;  %v488_v43 = vmov 0   ;;  %v381_v44 = vcombine.low %v577_v10, %v587_v12  ;;  %vm489_vm0 = vmmov 0   ;;  %v328_v45 = vstv %s485_s13  ;;  %s74_s15 = scalar_lea.vmem %s786_s0, %s402_s3  ;;  %s70_s13 = sadd.s32 1, %s485_s13  }
  0x10   : > { %223 = vmatpush1.bf16.msra.mxu0 %v375_v36  ;;  %413 = vmatpush3.bf16.msra.mxu1 %v377_v39  ;;  %v385_v46 = vcombine.high %v597_v14, %v607_v16  ;;  %vm329_vm1 = vcmp.lt.s32.totalorder %v328_v45, %v532_v1  ;;  %v383_v47 = vcombine.low %v582_v11, %v592_v13  ;;  %v79_v35 = vlaneseq  ;;  %v75_v39 = vld [vmem:[%s74_s15] sm:$0xff]  ;;  %p67_p0 = scmp.ge.s32.totalorder %s70_s13, 8  }
  0x11   : > { %224 = vmatprep.subr.bf16.mxu0 %v379_v37  ;;  %254 = vmatprep.mubr.bf16.mxu0 %v488_v43  ;;  %v330_v48 = vsel %vm329_vm1, 1, %v488_v43  ;;  %v384_v49 = vcombine.low %v597_v14, %v607_v16  ;;  %v388_v50 = vcombine.high %v617_v18, %v627_v20  ;;  %v386_v51 = vcombine.low %v602_v15, %v612_v17  ;;  %s490_s20 = smov (%p67_p0), [#allocation3]  }
  0x12   : > { %414 = vmatprep.subr.bf16.mxu1 %v487_v41  ;;  %428 = vmatprep.mubr.msk.bf16.mxu1 %vm489_vm0, %v487_v41  ;;  %v387_v52 = vcombine.low %v617_v18, %v627_v20  ;;  %v391_v53 = vcombine.high %v637_v22, %v647_v24  ;;  %v389_v54 = vcombine.low %v622_v19, %v632_v21  ;;  %v80_v36 = vshrl.u32 %v79_v35, 7  ;;  %s355_s21 = sshll.u32 (%p67_p0), %s490_s20, 4  ;;  %s356_s21 = int_to_ptr.vmem [resolvable:$true] %s355_s21 }
  0x13   : > { %444 = vset.pattern.permute.xlu0 %v488_v43  ;;  %v390_v55 = vcombine.low %v637_v22, %v647_v24  ;;  %v394_v56 = vcombine.high %v657_v26, %v667_v28  ;;  %v392_v57 = vcombine.low %v642_v23, %v652_v25  ;;  %v393_v58 = vcombine.low %v657_v26, %v667_v28  ;;  %s455_s22 = scalar_lea.vmem (%p67_p0), %s356_s21, 128  ;;  %p460_p2 = scmp.lt.s32.totalorder (%p67_p0), %s356_s21, %s356_s21 }
  0x14   : > { %225 = vmatpush1.bf16.msra.mxu0 %v378_v38  ;;  %415 = vmatpush3.bf16.msra.mxu1 %v380_v42  ;;  %v397_v59 = vcombine.high %v677_v30, %v687_v32  ;;  %v395_v60 = vcombine.low %v662_v27, %v672_v29  ;;  %v396_v61 = vcombine.low %v677_v30, %v687_v32  ;;  %v81_v37 = vsub.s32 0, %v80_v36  ;;  %p456_p1 = scmp.ne.s32.totalorder (%p67_p0), %s356_s21, %s455_s22  ;;  %p461_p3 = scmp.lt.s32.totalorder (%p67_p0), %s455_s22, %s455_s22 }
  0x15   : > { %226 = vmatprep.subr.bf16.mxu0 %v382_v40  ;;  %416 = vmatprep.subr.bf16.mxu1 %v487_v41  ;;  %v398_v63 = vcombine.low %v682_v31, %v692_v33  ;;  %v77_v0 = vpack.c.bf16 %v752_v62, %v752_v62  ;;  %v85_v38 = vsub.s32 1, %v80_v36  ;;  %v303_v43 = vunpack.c.l.bf16 %v75_v39 }
  0x16   : > { %332 = vperm.xlu0 %444, %v330_v48   ;;  %v82_v40 = vrot.slane %v697_v34, %v81_v37  ;;  %p462_p4 = por (%p67_p0), %p461_p3, %p460_p2 }
  0x17   : > { %v86_v42 = vrot.slane %v697_v34, %v85_v38 }
  0x18   : > { %227 = vmatpush1.bf16.msra.mxu0 %v381_v44  ;;  %417 = vmatpush3.bf16.msra.mxu1 %v383_v47  ;;  %v304_v47 = vunpack.c.h.bf16 %v75_v39  ;;  %p463_p5 = pnand (%p67_p0), %p462_p4, %p456_p1 }
  0x19   : > { %228 = vmatprep.subr.bf16.mxu0 %v385_v46  ;;  %418 = vmatprep.subr.bf16.mxu1 %v487_v41 }
  0x1c   : > { %229 = vmatpush1.bf16.msra.mxu0 %v384_v49  ;;  %419 = vmatpush3.bf16.msra.mxu1 %v386_v51 }
  0x1d   : > { %230 = vmatprep.subr.bf16.mxu0 %v388_v50  ;;  %420 = vmatprep.subr.bf16.mxu1 %v487_v41 }
  0x20   : > { %231 = vmatpush1.bf16.msra.mxu0 %v387_v52  ;;  %421 = vmatpush3.bf16.msra.mxu1 %v389_v54 }
  0x21   : > { %232 = vmatprep.subr.bf16.mxu0 %v391_v53  ;;  %422 = vmatprep.subr.bf16.mxu1 %v487_v41 }
  0x24   : > { %233 = vmatpush1.bf16.msra.mxu0 %v390_v55  ;;  %423 = vmatpush3.bf16.msra.mxu1 %v392_v57 }
  0x25   : > { %234 = vmatprep.subr.bf16.mxu0 %v394_v56  ;;  %424 = vmatprep.subr.bf16.mxu1 %v487_v41 }
  0x28   : > { %235 = vmatpush1.bf16.msra.mxu0 %v393_v58  ;;  %425 = vmatpush3.bf16.msra.mxu1 %v395_v60  ;;  %v89_v60 = vsub.s32 2, %v80_v36 }
  0x29   : > { %236 = vmatprep.subr.bf16.mxu0 %v397_v59  ;;  %426 = vmatprep.subr.bf16.mxu1 %v487_v41 }
  0x2c   : > { %237 = vmatpush1.bf16.msra.mxu0 %v396_v61  ;;  %427 = vmatpush3.bf16.msra.mxu1 %v398_v63  ;;  %v90_v61 = vrot.slane %v697_v34, %v89_v60 }
  0x2f   : > { %255 = vmatmul.mubr.bf16.vlgmr.msra.gmra.mrb[0].mxu0 %v77_v0  ;;  %429 = vmatmul.mubr.bf16.vlgmr.msra.gmra.mrb[0].mxu1 %v77_v0  ;;  %v76_v0 = vld [vmem:[%s74_s15 + $0x8] sm:$0xf] }
  0x30   : > { %v305_v38 = vunpack.c.l.bf16 %v76_v0 }
 0x102   : > { %v256_v41 = vpop.f32.mrb[0].mxu0  ;;  %v297_v49 = vpop.f32.mrb[0].mxu1 }
 0x103   : > { %v257_v44 = vadd.f32 %v256_v41, %v82_v40  ;;  %v258_v45 = vpop.f32.mrb[1].mxu0  ;;  %v430_v52 = vpop.f32.mrb[1].mxu1  ;;  %v298_v37 = vadd.f32 %v297_v49, %v90_v61 }
 0x104   : > { %v259_v46 = vadd.f32 %v258_v45, %v86_v42  ;;  %v260_v48 = vpop.f32.mrb[2].mxu0  ;;  %v300_v53 = vpop.f32.mrb[2].mxu1 }
 0x105   : > { %v306_v50 = vadd.f32 %v303_v43, %v257_v44  ;;  %v261_v51 = vpop.f32.mrb[3].mxu0  ;;  %v431_v55 = vpop.f32.mrb[3].mxu1 }
 0x106   : > { %v313_v56 = vadd.f32 %v304_v47, %v259_v46  ;;  %v333_v41 = vpop.permute.xlu0 %332 }
 0x107   : > { %v399_v54 = vmul.f32 -1.442695, %v306_v50  ;;  %vm334_vm2 = vcmp.eq.s32.totalorder %v333_v41, 1 }
 0x108   : > { %v400_v57 = vmul.f32 -1.442695, %v313_v56 }
 0x109   : > { %445 = vpow2.f32 %v399_v54 }
 0x10a   : > { %447 = vpow2.f32 %v400_v57 }
 0x113   : > { %v446_v58 = vpop.eup %445 }
 0x114   : > { %v310_v59 = vadd.f32 1.0, %v446_v58  ;;  %v448_v63 = vpop.eup %447 }
 0x115   : > { %v317_v35 = vadd.f32 1.0, %v448_v63 }
 0x116   : > { %449 = vrcp.f32 %v310_v59 }
 0x117   : > { %451 = vrcp.f32 %v317_v35 }
 0x120   : > { %v450_v39 = vpop.eup %449 }
 0x121   : > { %v320_v40 = vmul.f32 %v450_v39, %v298_v37  ;;  %v452_v43 = vpop.eup %451 }
 0x122   : > { %v323_v44 = vsub.f32 1.0, %v452_v43  ;;  %v325_v36 = vmul.f32 %v452_v43, %v752_v62 }
 0x123   : > { %v321_v42 = vadd.f32 %v320_v40, %v305_v38 }
 0x125   : > { %453 = vtanh.f32 %v321_v42 }
 0x12f   : > { %v454_v45 = vpop.eup %453 }
 0x130   : > { %v324_v46 = vmul.f32 %v454_v45, %v323_v44 }
 0x131   :  { %69 = sbr.rel (!%p67_p0) target bundleno = 13 (0xd), region = 65 }
 0x132   : > { %v326_v47 = vadd.f32 %v325_v36, %v324_v46 }
 0x134   : > { %v335_v48 = vsel %vm334_vm2, %v326_v47, %v752_v62  ;;  %v337_v49 = vsel %vm334_vm2, %v326_v47, 0.0 }
 0x135   : > { %336 = vst [vmem:[#allocation2] sm:$0xff] %v335_v48  ;;  %v338_v50 = vpack.c.bf16 %v337_v49, %v337_v49 }
 0x137   : > { %341 = vst [vmem:[%s340_s19] sm:$0xf] %v338_v50 }
 0x13c   :  { %v345_v51 = vld [vmem:[#allocation2] sm:$0xff] }
 0x13d   :  { %346 = vst [vmem:[#allocation3] sm:$0xff] %v345_v51 }
 0x13e   :  { %466 = shalt.err (!%p463_p5)
}
 0x13f   :  { %s467_s25 = scalar_lea.hbm %s792_s6, 128 }
 0x140   :  { %p468_p6 = scmp.ne.s32.totalorder %s792_s6, %s467_s25  ;;  %p471_p7 = scmp.lt.u32.totalorder %s467_s25, %s792_s6 }
 0x142   :  { %p473_p8 = pnand %p471_p7, %p468_p6 }
 0x144   :  { %476 = shalt.err (!%p473_p8)
}
 0x145   :  { %358 = dma.vmem_to_hbm [thread:$0]  %s356_s21, 128, %s792_s6, [#allocation4]  }
 0x146   :  { %481 = dma.done.wait [#allocation4], 128  }
 0x147   :  { %482 = vsyncadd [#allocation4], 4294967168 }
 0x148   :  { %364 = vsyncpa [#allocation4], 1 }

// kernel: plain_seq2seq_forward.3
= control target key start
LH: loop header
LB: loop body
LE: loop exit
PB: predicated region body
PF: predicated region fallthrough
CT: control target
= control target key end

     0   :  { %s643_s7 = smov 0   ;;  %s711_s0 = inlined_call_operand.vmem [shape: bf16[8,8,384], index: 0, kind: input, shape index: {}]   ;;  %s712_s1 = inlined_call_operand.vmem [shape: s32[8,128], index: 1, kind: input, shape index: {}]   ;;  %s713_s2 = inlined_call_operand.vmem [shape: f32[8,128], index: 2, kind: input, shape index: {}]   ;;  %s714_s3 = inlined_call_operand.vmem [shape: bf16[128,384], index: 3, kind: input, shape index: {}]   ;;  %s715_s5 = inlined_call_operand.vmem [shape: f32[8,128], index: 5, kind: output, shape index: {}]   ;;  %s716_s4 = inlined_call_operand.vmem [shape: f32[1,384], index: 4, kind: input, shape index: {}]  }
   0x1   :  { %v25_v0 = vld [vmem:[%s713_s2] sm:$0xff]  ;;  %v486_v3 = vld [vmem:[%s714_s3 + $0x8] sm:$0xf]  ;;  %v491_v4 = vld [vmem:[%s714_s3 + $0xc] sm:$0xff] }
   0x2   :  { %v476_v1 = vld [vmem:[%s712_s1] sm:$0xff]  ;;  %26 = vst [vmem:[#allocation2] sm:$0xff] %v25_v0  ;;  %v496_v5 = vld [vmem:[%s714_s3 + $0x14] sm:$0xf]  ;;  %v501_v6 = vld [vmem:[%s714_s3 + $0x18] sm:$0xff] }
   0x3   :  { %v481_v2 = vld [vmem:[%s714_s3] sm:$0xff]  ;;  %v516_v9 = vld [vmem:[%s714_s3 + $0x2c] sm:$0xf]  ;;  %v521_v10 = vld [vmem:[%s714_s3 + $0x30] sm:$0xff] }
   0x4   :  { %v506_v7 = vld [vmem:[%s714_s3 + $0x20] sm:$0xf]  ;;  %v511_v8 = vld [vmem:[%s714_s3 + $0x24] sm:$0xff]  ;;  %v526_v11 = vld [vmem:[%s714_s3 + $0x38] sm:$0xf] }
   0x5   :  { %v531_v12 = vld [vmem:[%s714_s3 + $0x3c] sm:$0xff]  ;;  %v536_v13 = vld [vmem:[%s714_s3 + $0x44] sm:$0xf]  ;;  %v541_v14 = vld [vmem:[%s714_s3 + $0x48] sm:$0xff] }
   0x6   :  { %v546_v15 = vld [vmem:[%s714_s3 + $0x50] sm:$0xf]  ;;  %v551_v16 = vld [vmem:[%s714_s3 + $0x54] sm:$0xff]  ;;  %v556_v17 = vld [vmem:[%s714_s3 + $0x5c] sm:$0xf] }
   0x7   :  { %v561_v18 = vld [vmem:[%s714_s3 + $0x60] sm:$0xff]  ;;  %v566_v19 = vld [vmem:[%s714_s3 + $0x68] sm:$0xf]  ;;  %v571_v20 = vld [vmem:[%s714_s3 + $0x6c] sm:$0xff] }
   0x8   :  { %v576_v21 = vld [vmem:[%s714_s3 + $0x74] sm:$0xf]  ;;  %v581_v22 = vld [vmem:[%s714_s3 + $0x78] sm:$0xff]  ;;  %v586_v23 = vld [vmem:[%s714_s3 + $0x80] sm:$0xf] }
   0x9   :  { %v591_v24 = vld [vmem:[%s714_s3 + $0x84] sm:$0xff]  ;;  %v596_v25 = vld [vmem:[%s714_s3 + $0x8c] sm:$0xf]  ;;  %v601_v26 = vld [vmem:[%s714_s3 + $0x90] sm:$0xff] }
   0xa   :  { %v606_v27 = vld [vmem:[%s714_s3 + $0x98] sm:$0xf]  ;;  %v611_v28 = vld [vmem:[%s714_s3 + $0x9c] sm:$0xff]  ;;  %v616_v29 = vld [vmem:[%s714_s3 + $0xa4] sm:$0xf] }
   0xb   :  { %v621_v30 = vld [vmem:[%s714_s3 + $0xa8] sm:$0xff]  ;;  %v626_v31 = vld [vmem:[%s714_s3 + $0xb0] sm:$0xf]  ;;  %v631_v32 = vld [vmem:[%s714_s3 + $0xb4] sm:$0xff] }
   0xc   :  { %v636_v33 = vld [vmem:[%s714_s3 + $0xbc] sm:$0xf]  ;;  %v641_v34 = vld [vmem:[%s716_s4] sm:$0x7] }
   0xd LB: > { %v352_v35 = vcombine.high %v481_v2, %v491_v4  ;;  %v351_v36 = vcombine.low %v481_v2, %v491_v4  ;;  %v355_v37 = vcombine.high %v501_v6, %v511_v8  ;;  %v354_v38 = vcombine.low %v501_v6, %v511_v8  ;;  %v68_v62 = vld [vmem:[#allocation2] sm:$0xff]  ;;  %s377_s3 = smul.u32 12, %s435_s7  ;;  %s435_s7 = sphi %s643_s7, %s67_s7  }
   0xe   : > { %v353_v39 = vcombine.low %v486_v3, %v496_v5  ;;  %v358_v40 = vcombine.high %v521_v10, %v531_v12  ;;  %v437_v41 = vmov 0.0   ;;  %v356_v42 = vcombine.low %v506_v7, %v516_v9 }
   0xf   : > { %219 = vmatprep.subr.bf16.mxu0 %v352_v35  ;;  %387 = vmatprep.subr.bf16.mxu1 %v437_v41  ;;  %v438_v43 = vmov 0   ;;  %v357_v44 = vcombine.low %v521_v10, %v531_v12  ;;  %vm439_vm0 = vmmov 0   ;;  %v325_v45 = vstv %s435_s7  ;;  %s71_s9 = scalar_lea.vmem %s711_s0, %s377_s3  ;;  %s67_s7 = sadd.s32 1, %s435_s7  }
  0x10   : > { %220 = vmatpush1.bf16.msra.mxu0 %v351_v36  ;;  %388 = vmatpush3.bf16.msra.mxu1 %v353_v39  ;;  %v361_v46 = vcombine.high %v541_v14, %v551_v16  ;;  %vm326_vm1 = vcmp.lt.s32.totalorder %v325_v45, %v476_v1  ;;  %v359_v47 = vcombine.low %v526_v11, %v536_v13  ;;  %v76_v35 = vlaneseq  ;;  %v72_v39 = vld [vmem:[%s71_s9] sm:$0xff]  ;;  %p64_p0 = scmp.ge.s32.totalorder %s67_s7, 8  }
  0x11   : > { %221 = vmatprep.subr.bf16.mxu0 %v355_v37  ;;  %251 = vmatprep.mubr.bf16.mxu0 %v438_v43  ;;  %v327_v48 = vsel %vm326_vm1, 1, %v438_v43  ;;  %v360_v49 = vcombine.low %v541_v14, %v551_v16  ;;  %v364_v50 = vcombine.high %v561_v18, %v571_v20  ;;  %v362_v51 = vcombine.low %v546_v15, %v556_v17 }
  0x12   : > { %389 = vmatprep.subr.bf16.mxu1 %v437_v41  ;;  %403 = vmatprep.mubr.msk.bf16.mxu1 %vm439_vm0, %v437_v41  ;;  %v363_v52 = vcombine.low %v561_v18, %v571_v20  ;;  %v367_v53 = vcombine.high %v581_v22, %v591_v24  ;;  %v365_v54 = vcombine.low %v566_v19, %v576_v21  ;;  %v77_v36 = vshrl.u32 %v76_v35, 7 }
  0x13   : > { %418 = vset.pattern.permute.xlu0 %v438_v43  ;;  %v366_v55 = vcombine.low %v581_v22, %v591_v24  ;;  %v370_v56 = vcombine.high %v601_v26, %v611_v28  ;;  %v368_v57 = vcombine.low %v586_v23, %v596_v25  ;;  %v369_v58 = vcombine.low %v601_v26, %v611_v28 }
  0x14   : > { %222 = vmatpush1.bf16.msra.mxu0 %v354_v38  ;;  %390 = vmatpush3.bf16.msra.mxu1 %v356_v42  ;;  %v373_v59 = vcombine.high %v621_v30, %v631_v32  ;;  %v371_v60 = vcombine.low %v606_v27, %v616_v29  ;;  %v372_v61 = vcombine.low %v621_v30, %v631_v32  ;;  %v78_v37 = vsub.s32 0, %v77_v36 }
  0x15   : > { %223 = vmatprep.subr.bf16.mxu0 %v358_v40  ;;  %391 = vmatprep.subr.bf16.mxu1 %v437_v41  ;;  %v374_v63 = vcombine.low %v626_v31, %v636_v33  ;;  %v74_v0 = vpack.c.bf16 %v68_v62, %v68_v62  ;;  %v82_v38 = vsub.s32 1, %v77_v36  ;;  %v300_v43 = vunpack.c.l.bf16 %v72_v39 }
  0x16   : > { %329 = vperm.xlu0 %418, %v327_v48   ;;  %v79_v40 = vrot.slane %v641_v34, %v78_v37 }
  0x17   : > { %v83_v42 = vrot.slane %v641_v34, %v82_v38 }
  0x18   : > { %224 = vmatpush1.bf16.msra.mxu0 %v357_v44  ;;  %392 = vmatpush3.bf16.msra.mxu1 %v359_v47  ;;  %v301_v44 = vunpack.c.h.bf16 %v72_v39 }
  0x19   : > { %225 = vmatprep.subr.bf16.mxu0 %v361_v46  ;;  %393 = vmatprep.subr.bf16.mxu1 %v437_v41 }
  0x1c   : > { %226 = vmatpush1.bf16.msra.mxu0 %v360_v49  ;;  %394 = vmatpush3.bf16.msra.mxu1 %v362_v51 }
  0x1d   : > { %227 = vmatprep.subr.bf16.mxu0 %v364_v50  ;;  %395 = vmatprep.subr.bf16.mxu1 %v437_v41 }
  0x20   : > { %228 = vmatpush1.bf16.msra.mxu0 %v363_v52  ;;  %396 = vmatpush3.bf16.msra.mxu1 %v365_v54 }
  0x21   : > { %229 = vmatprep.subr.bf16.mxu0 %v367_v53  ;;  %397 = vmatprep.subr.bf16.mxu1 %v437_v41 }
  0x24   : > { %230 = vmatpush1.bf16.msra.mxu0 %v366_v55  ;;  %398 = vmatpush3.bf16.msra.mxu1 %v368_v57 }
  0x25   : > { %231 = vmatprep.subr.bf16.mxu0 %v370_v56  ;;  %399 = vmatprep.subr.bf16.mxu1 %v437_v41 }
  0x28   : > { %232 = vmatpush1.bf16.msra.mxu0 %v369_v58  ;;  %400 = vmatpush3.bf16.msra.mxu1 %v371_v60  ;;  %v86_v60 = vsub.s32 2, %v77_v36 }
  0x29   : > { %233 = vmatprep.subr.bf16.mxu0 %v373_v59  ;;  %401 = vmatprep.subr.bf16.mxu1 %v437_v41 }
  0x2c   : > { %234 = vmatpush1.bf16.msra.mxu0 %v372_v61  ;;  %402 = vmatpush3.bf16.msra.mxu1 %v374_v63  ;;  %v87_v61 = vrot.slane %v641_v34, %v86_v60 }
  0x2f   : > { %252 = vmatmul.mubr.bf16.vlgmr.msra.gmra.mrb[0].mxu0 %v74_v0  ;;  %404 = vmatmul.mubr.bf16.vlgmr.msra.gmra.mrb[0].mxu1 %v74_v0  ;;  %v73_v0 = vld [vmem:[%s71_s9 + $0x8] sm:$0xf] }
  0x30   : > { %v302_v38 = vunpack.c.l.bf16 %v73_v0 }
 0x102   : > { %v253_v41 = vpop.f32.mrb[0].mxu0  ;;  %v294_v49 = vpop.f32.mrb[0].mxu1 }
 0x103   : > { %v254_v45 = vadd.f32 %v253_v41, %v79_v40  ;;  %v255_v46 = vpop.f32.mrb[1].mxu0  ;;  %v405_v52 = vpop.f32.mrb[1].mxu1  ;;  %v295_v37 = vadd.f32 %v294_v49, %v87_v61 }
 0x104   : > { %v256_v47 = vadd.f32 %v255_v46, %v83_v42  ;;  %v257_v48 = vpop.f32.mrb[2].mxu0  ;;  %v297_v54 = vpop.f32.mrb[2].mxu1 }
 0x105   : > { %v303_v50 = vadd.f32 %v300_v43, %v254_v45  ;;  %v258_v51 = vpop.f32.mrb[3].mxu0  ;;  %v406_v56 = vpop.f32.mrb[3].mxu1 }
 0x106   : > { %v310_v53 = vadd.f32 %v301_v44, %v256_v47  ;;  %v330_v41 = vpop.permute.xlu0 %329 }
 0x107   : > { %v375_v55 = vmul.f32 -1.442695, %v303_v50  ;;  %vm331_vm2 = vcmp.eq.s32.totalorder %v330_v41, 1 }
 0x108   : > { %v376_v57 = vmul.f32 -1.442695, %v310_v53 }
 0x109   : > { %419 = vpow2.f32 %v375_v55 }
 0x10a   : > { %421 = vpow2.f32 %v376_v57 }
 0x113   : > { %v420_v58 = vpop.eup %419 }
 0x114   : > { %v307_v59 = vadd.f32 1.0, %v420_v58  ;;  %v422_v63 = vpop.eup %421 }
 0x115   : > { %v314_v35 = vadd.f32 1.0, %v422_v63 }
 0x116   : > { %423 = vrcp.f32 %v307_v59 }
 0x117   : > { %425 = vrcp.f32 %v314_v35 }
 0x120   : > { %v424_v39 = vpop.eup %423 }
 0x121   : > { %v317_v40 = vmul.f32 %v424_v39, %v295_v37  ;;  %v426_v43 = vpop.eup %425 }
 0x122   : > { %v320_v44 = vsub.f32 1.0, %v426_v43  ;;  %v322_v47 = vmul.f32 %v426_v43, %v68_v62 }
 0x123   : > { %v318_v42 = vadd.f32 %v317_v40, %v302_v38 }
 0x125   : > { %427 = vtanh.f32 %v318_v42 }
 0x12f   : > { %v428_v45 = vpop.eup %427  ;;  %66 = sbr.rel (!%p64_p0) target bundleno = 13 (0xd), region = 56 }
 0x130   : > { %v321_v46 = vmul.f32 %v428_v45, %v320_v44 }
 0x132   : > { %v323_v36 = vadd.f32 %v322_v47, %v321_v46 }
 0x134   : > { %v332_v48 = vsel %vm331_vm2, %v323_v36, %v68_v62 }
 0x135   : > { %333 = vst [vmem:[#allocation2] sm:$0xff] %v332_v48 }
 0x13c   :  { %v337_v49 = vld [vmem:[#allocation2] sm:$0xff] }
 0x13d   :  { %338 = vst [vmem:[%s715_s5] sm:$0xff] %v337_v49 }

// kernel: plain_seq2seq_forward.5
= control target key start
LH: loop header
LB: loop body
LE: loop exit
PB: predicated region body
PF: predicated region fallthrough
CT: control target
= control target key end

     0   :  { %s543_s1 = inlined_call_operand.vmem [shape: bf16[128,128], index: 1, kind: input, shape index: {}]   ;;  %s544_s0 = inlined_call_operand.vmem [shape: bf16[64,128], index: 0, kind: input, shape index: {}]   ;;  %s545_s2 = inlined_call_operand.vmem [shape: f32[1,128], index: 2, kind: input, shape index: {}]   ;;  %s546_s3 = inlined_call_operand.vmem [shape: f32[64,128], index: 3, kind: output, shape index: {}]  }
   0x1   :  { %v348_v0 = vld [vmem:[%s543_s1] sm:$0xff]   ;;  %v349_v1 = vld [vmem:[%s543_s1 + $0x8] sm:$0xff]   ;;  %v350_v2 = vld [vmem:[%s543_s1 + $0x10] sm:$0xff]  }
   0x2   :  { %308 = vmatprep.subr.bf16.mxu0 %v348_v0  ;;  %332 = vmatprep.subr.bf16.mxu1 %v348_v0  ;;  %v351_v3 = vld [vmem:[%s543_s1 + $0x18] sm:$0xff]   ;;  %v356_v4 = vld [vmem:[%s544_s0] sm:$0xff]   ;;  %v358_v5 = vld [vmem:[%s544_s0 + $0x10] sm:$0xff]  }
   0x3   :  { %309 = vmatpush3.bf16.msra.mxu0 %v348_v0  ;;  %340 = vmatpush3.bf16.msra.mxu1 %v348_v0  ;;  %v352_v6 = vld [vmem:[%s543_s1 + $0x20] sm:$0xff]   ;;  %v353_v7 = vld [vmem:[%s543_s1 + $0x28] sm:$0xff]   ;;  %v354_v8 = vld [vmem:[%s543_s1 + $0x30] sm:$0xff]  }
   0x4   :  { %310 = vmatprep.subr.bf16.mxu0 %v349_v1  ;;  %333 = vmatprep.subr.bf16.mxu1 %v349_v1  ;;  %v355_v9 = vld [vmem:[%s543_s1 + $0x38] sm:$0xff]   ;;  %v357_v10 = vld [vmem:[%s544_s0 + $0x8] sm:$0xff]   ;;  %v283_v12 = vld [vmem:[%s545_s2] ss:$0 sm:$0xff] }
   0x5   :  { %324 = vmatprep.mubr.bf16.mxu0 %v356_v4  ;;  %328 = vmatprep.mubr.bf16.mxu1 %v358_v5  ;;  %v359_v11 = vld [vmem:[%s544_s0 + $0x18] sm:$0xff]  }
   0x7   :  { %311 = vmatpush3.bf16.msra.mxu0 %v349_v1  ;;  %341 = vmatpush3.bf16.msra.mxu1 %v349_v1 }
   0x8   :  { %312 = vmatprep.subr.bf16.mxu0 %v350_v2  ;;  %334 = vmatprep.subr.bf16.mxu1 %v350_v2 }
   0xb   :  { %313 = vmatpush3.bf16.msra.mxu0 %v350_v2  ;;  %342 = vmatpush3.bf16.msra.mxu1 %v350_v2 }
   0xc   :  { %314 = vmatprep.subr.bf16.mxu0 %v351_v3  ;;  %335 = vmatprep.subr.bf16.mxu1 %v351_v3 }
   0xf   :  { %315 = vmatpush3.bf16.msra.mxu0 %v351_v3  ;;  %343 = vmatpush3.bf16.msra.mxu1 %v351_v3 }
  0x10   :  { %316 = vmatprep.subr.bf16.mxu0 %v352_v6  ;;  %336 = vmatprep.subr.bf16.mxu1 %v352_v6 }
  0x13   :  { %317 = vmatpush3.bf16.msra.mxu0 %v352_v6  ;;  %344 = vmatpush3.bf16.msra.mxu1 %v352_v6 }
  0x14   :  { %318 = vmatprep.subr.bf16.mxu0 %v353_v7  ;;  %337 = vmatprep.subr.bf16.mxu1 %v353_v7 }
  0x17   :  { %319 = vmatpush3.bf16.msra.mxu0 %v353_v7  ;;  %345 = vmatpush3.bf16.msra.mxu1 %v353_v7 }
  0x18   :  { %320 = vmatprep.subr.bf16.mxu0 %v354_v8  ;;  %338 = vmatprep.subr.bf16.mxu1 %v354_v8 }
  0x1b   :  { %321 = vmatpush3.bf16.msra.mxu0 %v354_v8  ;;  %346 = vmatpush3.bf16.msra.mxu1 %v354_v8 }
  0x1c   :  { %322 = vmatprep.subr.bf16.mxu0 %v355_v9  ;;  %339 = vmatprep.subr.bf16.mxu1 %v355_v9 }
  0x1f   :  { %323 = vmatpush3.bf16.msra.mxu0 %v355_v9  ;;  %347 = vmatpush3.bf16.msra.mxu1 %v355_v9 }
  0x22   :  { %325 = vmatmul.mubr.bf16.vlgmr.msra.gmra.mrb[0].mxu0 %v357_v10  ;;  %329 = vmatmul.mubr.bf16.vlgmr.msra.gmra.mrb[0].mxu1 %v359_v11 }
  0xf5   :  { %v326_v13 = vpop.f32.mrb[0].mxu0  ;;  %v330_v14 = vpop.f32.mrb[0].mxu1 }
  0xf6   :  { %v451_v15 = vadd.f32 %v326_v13, %v283_v12  ;;  %v152_v16 = vpop.f32.mrb[1].mxu0  ;;  %v168_v17 = vpop.f32.mrb[1].mxu1  ;;  %v471_v28 = vadd.f32 %v330_v14, %v283_v12 }
  0xf7   :  { %v453_v18 = vadd.f32 %v283_v12, %v152_v16  ;;  %v327_v19 = vpop.f32.mrb[2].mxu0  ;;  %v331_v20 = vpop.f32.mrb[2].mxu1  ;;  %v456_v23 = vadd.f32 %v283_v12, %v168_v17 }
  0xf8   :  { %187 = vmax.xlane.f32.xlu1 %v451_v15  ;;  %v155_v21 = vpop.f32.mrb[3].mxu0  ;;  %v171_v22 = vpop.f32.mrb[3].mxu1  ;;  %v459_v24 = vadd.f32 %v327_v19, %v283_v12  ;;  %v469_v27 = vadd.f32 %v331_v20, %v283_v12 }
  0xf9   :  { %183 = vmax.xlane.f32.xlu0 %v453_v18  ;;  %v463_v25 = vadd.f32 %v283_v12, %v171_v22  ;;  %v465_v26 = vadd.f32 %v283_v12, %v155_v21 }
  0xfc   :  { %189 = vmax.xlane.f32.xlu1 %v459_v24 }
  0xfd   :  { %191 = vmax.xlane.f32.xlu0 %v456_v23 }
 0x100   :  { %193 = vmax.xlane.f32.xlu1 %v463_v25 }
 0x101   :  { %185 = vmax.xlane.f32.xlu0 %v465_v26 }
 0x104   :  { %197 = vmax.xlane.f32.xlu1 %v469_v27 }
 0x105   :  { %195 = vmax.xlane.f32.xlu0 %v471_v28 }
 0x185   :  { %v188_v29 = vpop.xlane.xlu1 %187 }
 0x186   :  { %v201_v30 = vsub.f32 %v451_v15, %v188_v29  ;;  %v476_v31 = vpop.xlane.xlu0 %183 }
 0x187   :  { %v199_v32 = vsub.f32 %v453_v18, %v476_v31 }
 0x188   :  { %v211_v33 = vmul.f32 1.442695, %v201_v30 }
 0x189   :  { %v207_v34 = vmul.f32 1.442695, %v199_v32  ;;  %v480_v35 = vpop.xlane.xlu1 %189 }
 0x18a   :  { %360 = vpow2.f32 %v211_v33  ;;  %v202_v36 = vsub.f32 %v459_v24, %v480_v35  ;;  %v484_v37 = vpop.xlane.xlu0 %191 }
 0x18b   :  { %v203_v38 = vsub.f32 %v456_v23, %v484_v37  ;;  %362 = vpow2.f32 %v207_v34 }
 0x18c   :  { %v213_v39 = vmul.f32 1.442695, %v202_v36 }
 0x18d   :  { %v488_v40 = vpop.xlane.xlu1 %193  ;;  %v215_v41 = vmul.f32 1.442695, %v203_v38 }
 0x18e   :  { %364 = vpow2.f32 %v213_v39  ;;  %v204_v42 = vsub.f32 %v463_v25, %v488_v40  ;;  %v492_v43 = vpop.xlane.xlu0 %185 }
 0x18f   :  { %v200_v44 = vsub.f32 %v465_v26, %v492_v43  ;;  %366 = vpow2.f32 %v215_v41 }
 0x190   :  { %v217_v47 = vmul.f32 1.442695, %v204_v42 }
 0x191   :  { %v209_v45 = vmul.f32 1.442695, %v200_v44  ;;  %v496_v46 = vpop.xlane.xlu1 %197 }
 0x192   :  { %v498_v48 = vpop.xlane.xlu0 %195  ;;  %v206_v49 = vsub.f32 %v469_v27, %v496_v46 }
 0x193   :  { %368 = vpow2.f32 %v209_v45  ;;  %v205_v50 = vsub.f32 %v471_v28, %v498_v48 }
 0x194   :  { %v361_v51 = vpop.eup %360  ;;  %370 = vpow2.f32 %v217_v47  ;;  %v221_v54 = vmul.f32 1.442695, %v206_v49 }
 0x195   :  { %v219_v52 = vmul.f32 1.442695, %v205_v50  ;;  %227 = vadd.xlane.f32.xlu0 %v361_v51  ;;  %v363_v53 = vpop.eup %362 }
 0x197   :  { %372 = vpow2.f32 %v219_v52 }
 0x198   :  { %v365_v55 = vpop.eup %364  ;;  %374 = vpow2.f32 %v221_v54 }
 0x199   :  { %229 = vadd.xlane.f32.xlu1 %v365_v55  ;;  %223 = vadd.xlane.f32.xlu0 %v363_v53  ;;  %v367_v56 = vpop.eup %366 }
 0x19d   :  { %v369_v57 = vpop.eup %368  ;;  %231 = vadd.xlane.f32.xlu0 %v367_v56 }
 0x19e   :  { %225 = vadd.xlane.f32.xlu1 %v369_v57  ;;  %v371_v58 = vpop.eup %370 }
 0x1a1   :  { %v373_v59 = vpop.eup %372 }
 0x1a2   :  { %233 = vadd.xlane.f32.xlu1 %v371_v58  ;;  %235 = vadd.xlane.f32.xlu0 %v373_v59  ;;  %v375_v60 = vpop.eup %374 }
 0x1a6   :  { %237 = vadd.xlane.f32.xlu1 %v375_v60 }
 0x222   :  { %v228_v61 = vpop.xlane.xlu0 %227 }
 0x223   :  { %376 = vlog2.f32 %v228_v61 }
 0x226   :  { %v230_v62 = vpop.xlane.xlu1 %229  ;;  %v224_v63 = vpop.xlane.xlu0 %223 }
 0x227   :  { %378 = vlog2.f32 %v230_v62 }
 0x228   :  { %380 = vlog2.f32 %v224_v63 }
 0x22a   :  { %v232_v0 = vpop.xlane.xlu0 %231 }
 0x22b   :  { %382 = vlog2.f32 %v232_v0  ;;  %v226_v1 = vpop.xlane.xlu1 %225 }
 0x22c   :  { %384 = vlog2.f32 %v226_v1 }
 0x22d   :  { %v377_v2 = vpop.eup %376 }
 0x22e   :  { %v244_v3 = vmul.f32 0.6931472, %v377_v2 }
 0x22f   :  { %v234_v4 = vpop.xlane.xlu1 %233  ;;  %v236_v5 = vpop.xlane.xlu0 %235 }
 0x230   :  { %v257_v6 = vadd.f32 %v244_v3, %v188_v29  ;;  %386 = vlog2.f32 %v234_v4 }
 0x231   :  { %v379_v7 = vpop.eup %378  ;;  %388 = vlog2.f32 %v236_v5 }
 0x232   :  { %v381_v8 = vpop.eup %380  ;;  %v265_v9 = vsub.f32 %v451_v15, %v257_v6  ;;  %v246_v10 = vmul.f32 0.6931472, %v379_v7 }
 0x233   :  { %v240_v11 = vmul.f32 0.6931472, %v381_v8  ;;  %v238_v12 = vpop.xlane.xlu1 %237 }
 0x234   :  { %273 = vst [vmem:[%s546_s3 + $0x10] sm:$0xff] %v265_v9  ;;  %v258_v13 = vadd.f32 %v246_v10, %v480_v35  ;;  %390 = vlog2.f32 %v238_v12 }
 0x235   :  { %v383_v14 = vpop.eup %382  ;;  %v255_v16 = vadd.f32 %v240_v11, %v476_v31 }
 0x236   :  { %v385_v17 = vpop.eup %384  ;;  %v266_v19 = vsub.f32 %v459_v24, %v258_v13  ;;  %v248_v20 = vmul.f32 0.6931472, %v383_v14 }
 0x237   :  { %v263_v21 = vsub.f32 %v453_v18, %v255_v16  ;;  %v242_v15 = vmul.f32 0.6931472, %v385_v17 }
 0x238   :  { %274 = vst [vmem:[%s546_s3 + $0x18] sm:$0xff] %v266_v19  ;;  %v259_v22 = vadd.f32 %v248_v20, %v484_v37 }
 0x239   :  { %271 = vst [vmem:[%s546_s3] sm:$0xff] %v263_v21  ;;  %v256_v29 = vadd.f32 %v242_v15, %v492_v43 }
 0x23a   :  { %v387_v30 = vpop.eup %386  ;;  %v267_v31 = vsub.f32 %v456_v23, %v259_v22 }
 0x23b   :  { %v389_v24 = vpop.eup %388  ;;  %v264_v32 = vsub.f32 %v465_v26, %v256_v29  ;;  %v250_v18 = vmul.f32 0.6931472, %v387_v30 }
 0x23c   :  { %275 = vst [vmem:[%s546_s3 + $0x20] sm:$0xff] %v267_v31  ;;  %v252_v33 = vmul.f32 0.6931472, %v389_v24 }
 0x23d   :  { %272 = vst [vmem:[%s546_s3 + $0x8] sm:$0xff] %v264_v32  ;;  %v260_v34 = vadd.f32 %v250_v18, %v488_v40 }
 0x23e   :  { %v391_v35 = vpop.eup %390  ;;  %v261_v36 = vadd.f32 %v252_v33, %v498_v48 }
 0x23f   :  { %v268_v23 = vsub.f32 %v463_v25, %v260_v34  ;;  %v254_v37 = vmul.f32 0.6931472, %v391_v35 }
 0x240   :  { %v269_v26 = vsub.f32 %v471_v28, %v261_v36 }
 0x241   :  { %276 = vst [vmem:[%s546_s3 + $0x28] sm:$0xff] %v268_v23  ;;  %v262_v38 = vadd.f32 %v254_v37, %v496_v46 }
 0x242   :  { %277 = vst [vmem:[%s546_s3 + $0x30] sm:$0xff] %v269_v26 }
 0x243   :  { %v270_v39 = vsub.f32 %v469_v27, %v262_v38 }
 0x245   :  { %278 = vst [vmem:[%s546_s3 + $0x38] sm:$0xff] %v270_v39 }

</bundles_post_ra>
